<compile_context>
chip_gen: v6e
topology: v6e:2x2x1
jax: 0.10.0
libtpu: 0.0.40
codegen_flags: <defaults>
</compile_context>

<pallas_src>
import jax
import jax.numpy as jnp
from jax.experimental import pallas as pl
from jax.experimental.pallas import tpu as pltpu


def _round_up(x, m):
    return (x + m - 1) // m * m


# ----------------------------------------------------------------------------
# Pallas kernels
# ----------------------------------------------------------------------------
def _fused_backbone_heads_kernel(x_ref, bbw_ref, bbb_ref, hw_ref, hb_ref,
                                 feat_ref, head_ref, acc_ref):
    """Grid = (M tiles, K tiles).  K is the reduction (last, "arbitrary").

    Accumulates x_tile @ bbw_tile into an f32 VMEM accumulator; on the last K
    step applies bias + ReLU, writes the features output, and immediately does
    the merged cluster-head matmul against the lane-dense (D, H*C) slab.
    """
    k = pl.program_id(1)

    @pl.when(k == 0)
    def _():
        acc_ref[...] = jnp.zeros_like(acc_ref)

    acc_ref[...] += jnp.dot(x_ref[...], bbw_ref[...],
                            preferred_element_type=jnp.float32)

    @pl.when(k == pl.num_programs(1) - 1)
    def _():
        feat = jnp.maximum(acc_ref[...] + bbb_ref[...], 0.0)          # f32 epilogue
        feat_ref[...] = feat.astype(feat_ref.dtype)
        logits = jnp.dot(feat.astype(hw_ref.dtype), hw_ref[...],
                         preferred_element_type=jnp.float32)
        head_ref[...] = (logits + hb_ref[...]).astype(head_ref.dtype)


def _heads_only_kernel(f_ref, hw_ref, hb_ref, o_ref):
    """Merged cluster heads: o = features @ W_merged + b_merged (lane-dense)."""
    y = jnp.dot(f_ref[...], hw_ref[...], preferred_element_type=jnp.float32)
    o_ref[...] = (y + hb_ref[...]).astype(o_ref.dtype)


def fused_backbone_heads(x_flat, bbw_p, bbb_p, hw_p, hb_p, *, tm, tk):
    """x_flat: (Bp, Kp) bf16 (padded); returns (features (Bp, Dp) f32,
    head slab (Bp, Np) f32)."""
    Bp, Kp = x_flat.shape
    _, Dp = bbw_p.shape
    _, Np = hw_p.shape
    grid = (Bp // tm, Kp // tk)
    return pl.pallas_call(
        _fused_backbone_heads_kernel,
        out_shape=(jax.ShapeDtypeStruct((Bp, Dp), jnp.float32),
                   jax.ShapeDtypeStruct((Bp, Np), jnp.float32)),
        grid_spec=pltpu.PrefetchScalarGridSpec(
            num_scalar_prefetch=0,
            grid=grid,
            in_specs=[
                pl.BlockSpec((tm, tk), lambda m, k: (m, k)),   # x tile
                pl.BlockSpec((tk, Dp), lambda m, k: (k, 0)),   # backbone W tile
                pl.BlockSpec((1, Dp), lambda m, k: (0, 0)),    # backbone bias
                pl.BlockSpec((Dp, Np), lambda m, k: (0, 0)),   # merged head W
                pl.BlockSpec((1, Np), lambda m, k: (0, 0)),    # merged head bias
            ],
            out_specs=[
                pl.BlockSpec((tm, Dp), lambda m, k: (m, 0)),   # features
                pl.BlockSpec((tm, Np), lambda m, k: (m, 0)),   # head slab
            ],
            scratch_shapes=[pltpu.VMEM((tm, Dp), jnp.float32)],
        ),
        compiler_params=pltpu.CompilerParams(
            dimension_semantics=("parallel", "arbitrary"),
            vmem_limit_bytes=32 * 1024 * 1024),
    )(x_flat, bbw_p, bbb_p, hw_p, hb_p)


def heads_only(feat, hw_p, hb_p):
    """feat: (Bp, Dp) bf16 (padded) -> (Bp, Np) f32 logits slab."""
    Bp, Dp = feat.shape
    _, Np = hw_p.shape
    return pl.pallas_call(
        _heads_only_kernel,
        out_shape=jax.ShapeDtypeStruct((Bp, Np), jnp.float32),
        grid=(1,),
        in_specs=[
            pl.BlockSpec((Bp, Dp), lambda i: (0, 0)),
            pl.BlockSpec((Dp, Np), lambda i: (0, 0)),
            pl.BlockSpec((1, Np), lambda i: (0, 0)),
        ],
        out_specs=pl.BlockSpec((Bp, Np), lambda i: (0, 0)),
        compiler_params=pltpu.CompilerParams(
            dimension_semantics=("arbitrary",),
            vmem_limit_bytes=32 * 1024 * 1024),
    )(feat, hw_p, hb_p)


# ----------------------------------------------------------------------------
# Model wrapper (mirrors ClusteringModel.forward semantics)
# ----------------------------------------------------------------------------
def _linear_init(key, fan_in, fan_out):
    """nn.Linear-style init: U(-1/sqrt(fan_in), +1/sqrt(fan_in))."""
    kw, kb = jax.random.split(key)
    bound = 1.0 / jnp.sqrt(jnp.float32(fan_in))
    w = jax.random.uniform(kw, (fan_in, fan_out), jnp.float32, -bound, bound)
    b = jax.random.uniform(kb, (fan_out,), jnp.float32, -bound, bound)
    return w, b


class ClusteringModelPallas:
    def __init__(self, key, input_shape_chw, backbone_dim, nclusters, nheads=1,
                 k_tile=512):
        assert isinstance(nheads, int) and nheads > 0
        self.nheads = nheads
        self.backbone_dim = backbone_dim
        self.nclusters = nclusters
        C, H, W = input_shape_chw
        self.in_dim = C * H * W

        # Padded / tiled dimensions.
        self.tk = min(k_tile, _round_up(self.in_dim, 128))
        self.Kp = _round_up(self.in_dim, self.tk)
        self.Dp = _round_up(backbone_dim, 128)
        self.HC = nheads * nclusters
        self.Np = _round_up(self.HC, 128)

        kb, kh = jax.random.split(key)
        # Canonical f32 parameters (reference / external API).
        self.bb_w, self.bb_b = _linear_init(kb, self.in_dim, backbone_dim)
        head_ws, head_bs = [], []
        for hk in jax.random.split(kh, nheads):
            w, b = _linear_init(hk, backbone_dim, nclusters)
            head_ws.append(w)
            head_bs.append(b)
        self.head_w = jnp.stack(head_ws)   # (H, D, nclusters) f32
        self.head_b = jnp.stack(head_bs)   # (H, nclusters)    f32

        # --- Pre-cast + pre-pad device parameters ONCE (not per forward). ---
        # Backbone weight: (Kp, Dp) bf16, zero-padded (zeros don't change x @ W).
        self.bbw_p = jnp.pad(self.bb_w.astype(jnp.bfloat16),
                             ((0, self.Kp - self.in_dim),
                              (0, self.Dp - backbone_dim)))
        self.bbb_p = jnp.pad(self.bb_b, (0, self.Dp - backbone_dim)).reshape(1, self.Dp)
        # Merged head weight: (H, D, C) -> (D, H*C), padded to (Dp, Np) bf16.
        hw_merged = jnp.transpose(self.head_w, (1, 0, 2)).reshape(backbone_dim, self.HC)
        self.hw_p = jnp.pad(hw_merged.astype(jnp.bfloat16),
                            ((0, self.Dp - backbone_dim), (0, self.Np - self.HC)))
        self.hb_p = jnp.pad(self.head_b.reshape(-1),
                            (0, self.Np - self.HC)).reshape(1, self.Np)

    # ---- helpers -----------------------------------------------------------
    def _batch_tiling(self, B):
        tm = 128 if B > 128 else _round_up(B, 8)
        Bp = _round_up(B, tm)
        return tm, Bp

    def _run_fused(self, x):
        B = x.shape[0]
        tm, Bp = self._batch_tiling(B)
        x_flat = x.reshape(B, -1).astype(jnp.bfloat16)
        x_pad = jnp.pad(x_flat, ((0, Bp - B), (0, self.Kp - self.in_dim)))
        feat_p, head_p = fused_backbone_heads(
            x_pad, self.bbw_p, self.bbb_p, self.hw_p, self.hb_p, tm=tm, tk=self.tk)
        features = feat_p[:B, :self.backbone_dim]
        heads = head_p[:B, :self.HC].reshape(B, self.nheads, self.nclusters)
        return features, heads

    def _heads_from_features(self, features):
        B = features.shape[0]
        _, Bp = self._batch_tiling(B)
        f_pad = jnp.pad(features.astype(jnp.bfloat16),
                        ((0, Bp - B), (0, self.Dp - self.backbone_dim)))
        head_p = heads_only(f_pad, self.hw_p, self.hb_p)
        return head_p[:B, :self.HC].reshape(B, self.nheads, self.nclusters)

    @staticmethod
    def _as_list(heads_stacked):
        # API parity with the PyTorch module (list of per-head tensors); slices
        # come lazily from the single lane-dense slab.
        return [heads_stacked[:, h, :] for h in range(heads_stacked.shape[1])]

    # ---- forward (same semantics as ClusteringModel.forward) ----------------
    def forward(self, x, forward_pass='default'):
        if forward_pass == 'default':
            _, heads = self._run_fused(x)
            out = self._as_list(heads)
        elif forward_pass == 'backbone':
            # Fused kernel also produces head logits; the extra (B,128)x(128,128)
            # matmul is negligible and keeps a single compiled kernel.
            features, _ = self._run_fused(x)
            out = features
        elif forward_pass == 'head':
            out = self._as_list(self._heads_from_features(x))
        elif forward_pass == 'return_all':
            features, heads = self._run_fused(x)
            out = {'features': features, 'output': self._as_list(heads)}
        else:
            raise ValueError('Invalid forward pass {}'.format(forward_pass))
        return out


# ----------------------------------------------------------------------------
# Demo / smoke test
# ----------------------------------------------------------------------------
if __name__ == "__main__":
    key = jax.random.PRNGKey(0)
    kx, kp = jax.random.split(key)

    B, C, Himg, Wimg = 2, 4, 16, 16          # in_dim = 1024 -> 2 K-tiles of 512
    backbone_dim, nclusters, nheads = 32, 10, 2

    x = jax.random.normal(kx, (B, C, Himg, Wimg), dtype=jnp.float32)

    model = ClusteringModelPallas(kp, (C, Himg, Wimg),
                                  backbone_dim, nclusters, nheads)

    out_default = model.forward(x, forward_pass='default')
    out_all = model.forward(x, forward_pass='return_all')
    feats = model.forward(x, forward_pass='backbone')
    out_head = model.forward(feats, forward_pass='head')

    jax.block_until_ready(out_default)
    jax.block_until_ready(out_all['features'])
    jax.block_until_ready(out_all['output'])
    jax.block_until_ready(out_head)

    assert len(out_default) == nheads
    assert out_default[0].shape == (B, nclusters)
    assert out_all['features'].shape == (B, backbone_dim)
    assert feats.shape == (B, backbone_dim)
    assert len(out_head) == nheads and out_head[0].shape == (B, nclusters)

    # Cross-check against a plain-JAX reference with bf16-rounded operands
    # (matmuls run on the MXU in bf16 with f32 accumulation).
    f32 = jnp.float32
    bf = lambda a: a.astype(jnp.bfloat16).astype(f32)
    x_flat = x.reshape(B, -1)
    feats_ref = jnp.maximum(bf(x_flat) @ bf(model.bb_w) + model.bb_b, 0.0)
    assert jnp.allclose(out_all['features'], feats_ref, atol=2e-2, rtol=2e-2)
    for h in range(nheads):
        ref = bf(feats_ref) @ bf(model.head_w[h]) + model.head_b[h]
        assert jnp.allclose(out_default[h], ref, atol=2e-2, rtol=2e-2)
        assert jnp.allclose(out_all['output'][h], ref, atol=2e-2, rtol=2e-2)
        ref_head = bf(feats) @ bf(model.head_w[h]) + model.head_b[h]
        assert jnp.allclose(out_head[h], ref_head, atol=2e-2, rtol=2e-2)

    print("KERNEL_OK")
</pallas_src>

<mosaic_0001>
module attributes {stable_mosaic.version = 11 : i64} {
  func.func @_fused_backbone_heads_kernel(%arg0: i32, %arg1: i32, %arg2: memref<8x512xbf16, #tpu.memory_space<vmem>>, %arg3: memref<512x128xbf16, #tpu.memory_space<vmem>>, %arg4: memref<1x128xf32, #tpu.memory_space<vmem>>, %arg5: memref<128x128xbf16, #tpu.memory_space<vmem>>, %arg6: memref<1x128xf32, #tpu.memory_space<vmem>>, %arg7: memref<8x128xf32, #tpu.memory_space<vmem>>, %arg8: memref<8x128xf32, #tpu.memory_space<vmem>>, %arg9: memref<8x128xf32, #tpu.memory_space<vmem>>) attributes {dimension_semantics = [#tpu.dimension_semantics<parallel>, #tpu.dimension_semantics<arbitrary>], iteration_bounds = array<i64: 1, 2>, scalar_prefetch = 0 : i64, scratch_operands = 1 : i64, tpu.core_type = #tpu.core_type<tc>, window_params = [{transform_indices = @transform_0, window_bounds = array<i64: 8, 512>}, {transform_indices = @transform_1, window_bounds = array<i64: 512, 128>}, {pipeline_mode = #tpu.pipeline_mode<synchronous>, transform_indices = @transform_2, window_bounds = array<i64: 1, 128>}, {pipeline_mode = #tpu.pipeline_mode<synchronous>, transform_indices = @transform_3, window_bounds = array<i64: 128, 128>}, {pipeline_mode = #tpu.pipeline_mode<synchronous>, transform_indices = @transform_4, window_bounds = array<i64: 1, 128>}, {transform_indices = @transform_5, window_bounds = array<i64: 8, 128>}, {transform_indices = @transform_6, window_bounds = array<i64: 8, 128>}]} {
    %c0_i32 = arith.constant 0 : i32
    %0 = arith.cmpi eq, %arg1, %c0_i32 : i32
    %1 = arith.extui %0 : i1 to i32
    %c0_i32_0 = arith.constant 0 : i32
    %2 = arith.cmpi ne, %1, %c0_i32_0 : i32
    scf.if %2 {
      %cst_9 = arith.constant 0.000000e+00 : f32
      %12 = vector.broadcast %cst_9 : f32 to vector<8x128xf32>
      %c0_10 = arith.constant 0 : index
      %c0_11 = arith.constant 0 : index
      %13 = vector.load %arg9[%c0_10, %c0_11] : memref<8x128xf32, #tpu.memory_space<vmem>>, vector<8x128xf32>
      tpu.vector_store %arg9[%c0_10, %c0_11], %12 {strides = array<i32>} : memref<8x128xf32, #tpu.memory_space<vmem>>, vector<8x128xf32>,
    } else {
    }
    %c0 = arith.constant 0 : index
    %c0_1 = arith.constant 0 : index
    %3 = vector.load %arg9[%c0, %c0_1] : memref<8x128xf32, #tpu.memory_space<vmem>>, vector<8x128xf32>
    %c0_2 = arith.constant 0 : index
    %c0_3 = arith.constant 0 : index
    %4 = vector.load %arg2[%c0_2, %c0_3] : memref<8x512xbf16, #tpu.memory_space<vmem>>, vector<8x512xbf16>
    %c0_4 = arith.constant 0 : index
    %c0_5 = arith.constant 0 : index
    %5 = vector.load %arg3[%c0_4, %c0_5] : memref<512x128xbf16, #tpu.memory_space<vmem>>, vector<512x128xbf16>
    %cst = arith.constant dense<0.000000e+00> : vector<8x128xf32>
    %6 = tpu.matmul %4, %5, %cst {dimension_numbers = #tpu.dot_dimension_numbers<[1], [0], [0], [1], [0, 0, 1, 1], [], []>} : vector<8x512xbf16>, vector<512x128xbf16>, vector<8x128xf32> -> vector<8x128xf32>
    %7 = arith.addf %3, %6 : vector<8x128xf32>
    %c0_6 = arith.constant 0 : index
    %c0_7 = arith.constant 0 : index
    %8 = vector.load %arg9[%c0_6, %c0_7] : memref<8x128xf32, #tpu.memory_space<vmem>>, vector<8x128xf32>
    tpu.vector_store %arg9[%c0_6, %c0_7], %7 {strides = array<i32>} : memref<8x128xf32, #tpu.memory_space<vmem>>, vector<8x128xf32>,
    %c1_i32 = arith.constant 1 : i32
    %9 = arith.cmpi eq, %arg1, %c1_i32 : i32
    %10 = arith.extui %9 : i1 to i32
    %c0_i32_8 = arith.constant 0 : i32
    %11 = arith.cmpi ne, %10, %c0_i32_8 : i32
    scf.if %11 {
      %c0_9 = arith.constant 0 : index
      %c0_10 = arith.constant 0 : index
      %12 = vector.load %arg9[%c0_9, %c0_10] : memref<8x128xf32, #tpu.memory_space<vmem>>, vector<8x128xf32>
      %c0_11 = arith.constant 0 : index
      %c0_12 = arith.constant 0 : index
      %13 = vector.load %arg4[%c0_11, %c0_12] : memref<1x128xf32, #tpu.memory_space<vmem>>, vector<1x128xf32>
      %14 = vector.broadcast %13 : vector<1x128xf32> to vector<8x128xf32>
      %15 = arith.addf %12, %14 : vector<8x128xf32>
      %cst_13 = arith.constant 0.000000e+00 : f32
      %16 = vector.broadcast %cst_13 : f32 to vector<8x128xf32>
      %17 = arith.maximumf %15, %16 : vector<8x128xf32>
      %c0_14 = arith.constant 0 : index
      %c0_15 = arith.constant 0 : index
      %18 = vector.load %arg7[%c0_14, %c0_15] : memref<8x128xf32, #tpu.memory_space<vmem>>, vector<8x128xf32>
      tpu.vector_store %arg7[%c0_14, %c0_15], %17 {strides = array<i32>} : memref<8x128xf32, #tpu.memory_space<vmem>>, vector<8x128xf32>,
      %19 = arith.truncf %17 : vector<8x128xf32> to vector<8x128xbf16>
      %c0_16 = arith.constant 0 : index
      %c0_17 = arith.constant 0 : index
      %20 = vector.load %arg5[%c0_16, %c0_17] : memref<128x128xbf16, #tpu.memory_space<vmem>>, vector<128x128xbf16>
      %cst_18 = arith.constant dense<0.000000e+00> : vector<8x128xf32>
      %21 = tpu.matmul %19, %20, %cst_18 {dimension_numbers = #tpu.dot_dimension_numbers<[1], [0], [0], [1], [0, 0, 1, 1], [], []>} : vector<8x128xbf16>, vector<128x128xbf16>, vector<8x128xf32> -> vector<8x128xf32>
      %c0_19 = arith.constant 0 : index
      %c0_20 = arith.constant 0 : index
      %22 = vector.load %arg6[%c0_19, %c0_20] : memref<1x128xf32, #tpu.memory_space<vmem>>, vector<1x128xf32>
      %23 = vector.broadcast %22 : vector<1x128xf32> to vector<8x128xf32>
      %24 = arith.addf %21, %23 : vector<8x128xf32>
      %c0_21 = arith.constant 0 : index
      %c0_22 = arith.constant 0 : index
      %25 = vector.load %arg8[%c0_21, %c0_22] : memref<8x128xf32, #tpu.memory_space<vmem>>, vector<8x128xf32>
      tpu.vector_store %arg8[%c0_21, %c0_22], %24 {strides = array<i32>} : memref<8x128xf32, #tpu.memory_space<vmem>>, vector<8x128xf32>,
    } else {
    }
    return
  }
  func.func @transform_0(%arg0: i32, %arg1: i32) -> (i32, i32) {
    %c0_i32 = arith.constant 0 : i32
    return %arg0, %arg1 : i32, i32
  }
  func.func @transform_1(%arg0: i32, %arg1: i32) -> (i32, i32) {
    %c0_i32 = arith.constant 0 : i32
    %c0_i32_0 = arith.constant 0 : i32
    return %arg1, %c0_i32 : i32, i32
  }
  func.func @transform_2(%arg0: i32, %arg1: i32) -> (i32, i32) {
    %c0_i32 = arith.constant 0 : i32
    %c0_i32_0 = arith.constant 0 : i32
    %c0_i32_1 = arith.constant 0 : i32
    return %c0_i32, %c0_i32_0 : i32, i32
  }
  func.func @transform_3(%arg0: i32, %arg1: i32) -> (i32, i32) {
    %c0_i32 = arith.constant 0 : i32
    %c0_i32_0 = arith.constant 0 : i32
    %c0_i32_1 = arith.constant 0 : i32
    return %c0_i32, %c0_i32_0 : i32, i32
  }
  func.func @transform_4(%arg0: i32, %arg1: i32) -> (i32, i32) {
    %c0_i32 = arith.constant 0 : i32
    %c0_i32_0 = arith.constant 0 : i32
    %c0_i32_1 = arith.constant 0 : i32
    return %c0_i32, %c0_i32_0 : i32, i32
  }
  func.func @transform_5(%arg0: i32, %arg1: i32) -> (i32, i32) {
    %c0_i32 = arith.constant 0 : i32
    %c0_i32_0 = arith.constant 0 : i32
    return %arg0, %c0_i32 : i32, i32
  }
  func.func @transform_6(%arg0: i32, %arg1: i32) -> (i32, i32) {
    %c0_i32 = arith.constant 0 : i32
    %c0_i32_0 = arith.constant 0 : i32
    return %arg0, %c0_i32 : i32, i32
  }
}

</mosaic_0001>

<bundles_post_ra>
// kernel: tpu_custom_call.1
= control target key start
LH: loop header
LB: loop body
LE: loop exit
PB: predicated region body
PF: predicated region fallthrough
CT: control target
= control target key end

     0   :  { %s1685_s0 = inlined_call_operand.hbm [shape: bf16[8,1024], index: 0, kind: input, shape index: {}]   ;;  %s1686_s1 = inlined_call_operand.hbm [shape: bf16[1024,128], index: 1, kind: input, shape index: {}]   ;;  %s1687_s2 = inlined_call_operand.vmem [shape: f32[1,128], index: 2, kind: input, shape index: {}]   ;;  %s1688_s3 = inlined_call_operand.hbm [shape: bf16[128,128], index: 3, kind: input, shape index: {}]   ;;  %s1689_s4 = inlined_call_operand.vmem [shape: f32[1,128], index: 4, kind: input, shape index: {}]   ;;  %s1690_s5 = inlined_call_operand.hbm [shape: f32[8,128], index: 5, kind: output, shape index: {0}]   ;;  %s1691_s6 = inlined_call_operand.hbm [shape: f32[8,128], index: 6, kind: output, shape index: {1}]  }
   0x1   :  { %1694 = sst [smem:[#allocation17_spill]] %s1685_s0 }
   0x2   :  { %1695 = sst [smem:[#allocation18_spill]] %s1688_s3 }
   0x3   :  { %12 = vsyncpa [#allocation4], 0 }
   0x4   :  { %14 = vsyncpa [#allocation4 + $0x1], 0 }
   0x5   :  { %15 = vsyncpa [#allocation7], 0 }
   0x6   :  { %17 = vsyncpa [#allocation7 + $0x1], 0 }
   0x7   :  { %18 = vsyncpa [#allocation5], 0 }
   0x8   :  { %19 = vsyncpa [#allocation11], 0  ;;  %s1477_s21 = smov 0   ;;  %s1479_s22 = smov 0  }
   0x9   :  { %s1481_s23 = smov 0   ;;  %s1483_s24 = smov 0  }
   0xa   :  { %s1485_s25 = smov 0   ;;  %s1487_s26 = smov 0  }
   0xb LB: > { %s1506_s27 = sadd.s32 4294967295, %s1430_s26   ;;  %p59_p0 = scmp.ne.s32.totalorder %s1414_s22, %s1410_s21  ;;  %s1430_s26 = sphi %s1487_s26, %s25_s26   ;;  %s1426_s25 = sphi %s1485_s25, %s1708_s25   ;;  %s1422_s24 = sphi %s1483_s24, %s1707_s24   ;;  %s1418_s23 = sphi %s1481_s23, %s1706_s23   ;;  %s1414_s22 = sphi %s1479_s22, %s1705_s22   ;;  %s1410_s21 = sphi %s1477_s21, %s1704_s21  }
   0xc   : > { %p60_p1 = scmp.eq.s32.totalorder %s1506_s27, 0  ;;  %p958_p2 = scmp.ge.s32.totalorder %s1430_s26, 1 }
   0xd   : > { %p211_p3 = scmp.lt.s32.totalorder %s1430_s26, 3  ;;  %s1432_s30 = smov [#allocation8]  }
   0xe   : > { %p1514_p4 = por %p60_p1, %p59_p0  ;;  %s226_s7 = sshll.u32 %s1432_s30, 4  ;;  %s227_s7 = int_to_ptr.vmem [resolvable:$true] %s226_s7 }
   0xf   : > { %p1518_p5 = pnand %p958_p2, %p211_p3  ;;  %s34_s9 = sadd.s32 1, %s1426_s25 }
  0x10   : > { %s1245_s10 = scalar_lea.vmem %s227_s7, 1024  ;;  %p1253_p12 = scmp.lt.s32.totalorder %s227_s7, %s227_s7 }
  0x11   : > { %p1116_p6 = pneg %p1518_p5  ;;  %p1246_p9 = scmp.ne.s32.totalorder %s227_s7, %s1245_s10 }
  0x12   : > { %p1254_p13 = scmp.lt.s32.totalorder %s1245_s10, %s1245_s10 }
  0x13   : > { %p1526_p7 = pnand %p1116_p6, %p60_p1 }
  0x14   : > { %p1255_p0 = por %p1254_p13, %p1253_p12 }
  0x15   : > { %p1236_p8 = pneg %p1526_p7 }
  0x17   : > { %p1248_p10 = pnand %p1246_p9, %p1236_p8 }
  0x19   : > { %p1249_p11 = pneg %p1248_p10 }
  0x1b   : > { %p1256_p2 = pnand %p1255_p0, %p1249_p11 }
  0x1d   : > { %1259 = shalt.err (!%p1256_p2)
}
  0x1e   : > { %s1692_s11 = smov 64   ;;  %s1693_s12 = smov 4  }
  0x1f   : > { %s1699_s3 = sld [smem:[#allocation18_spill]]  ;;  %p35_p3 = scmp.ge.s32.totalorder %s34_s9, 2 }
  0x20   : > { %s46_s15 = sadd.s32 1, %s1418_s23  ;;  %p53_p6 = scmp.ne.s32.totalorder %s1418_s23, %s1414_s22 }
  0x21   : > { %p54_p8 = scmp.eq.s32.totalorder %s1430_s26, 0  ;;  %s1710_s9 = smov (%p35_p3, %s34_s9), 0 }
  0x22   : > { %p1128_p10 = scmp.lt.s32.totalorder %s1430_s26, 2  ;;  %s42_s16 = ssub.s32 %s1426_s25, %s1710_s9 }
  0x23   : > { %p55_p9 = por %p54_p8, %p53_p6  ;;  %s243_s17 = sand.u32 1, %s1418_s23  }
  0x24   : > { %p44_p11 = scmp.eq.s32.totalorder %s42_s16, 0  ;;  %s961_s18 = sshll.u32 %s243_s17, 4 }
  0x25   : > { %1119 = dma.hbm_to_vmem [thread:$0]  (!%p1526_p7), %s1699_s3, 1024, %s227_s7, [#allocation7], %s1692_s11, %s1692_s11, %s1693_s12  }
  0x26   : > { %s1025_s19 = sshll.u32 %s1426_s25, 8  ;;  %s1700_s0 = sld [smem:[#allocation17_spill]] }
  0x27   : > { %s1553_s20 = scalar_select %p44_p11, %s1418_s23, %s46_s15  }
  0x28   : > { %s247_s8 = scalar_lea.vmem [#allocation3], %s961_s18  ;;  %p1558_p7 = pnand %p1128_p10, %p55_p9 }
  0x29   : > { %s257_s10 = sshll.u32 %s247_s8, 4  ;;  %s964_s14 = sshll.u32 %s243_s17, 8  ;;  %s258_s10 = int_to_ptr.vmem [resolvable:$true] %s257_s10 }
  0x2a   : > { %s244_s11 = scalar_lea.sflag [#allocation4], %s243_s17  ;;  %p1262_p12 = pneg %p1558_p7 }
  0x2b   : > { %s1273_s16 = scalar_lea.vmem %s258_s10, 256  ;;  %s1435_s15 = smov [#allocation3]  }
  0x2c   : > { %s255_s7 = scalar_lea.hbm %s1700_s0, %s1025_s19  ;;  %p1274_p13 = scmp.ne.s32.totalorder %s258_s10, %s1273_s16 }
  0x2d   : > { %s1278_s18 = sshll.u32 %s1435_s15, 4  ;;  %s1279_s18 = int_to_ptr.vmem [resolvable:$false] %s1278_s18 }
  0x2e   : > { %p1276_p0 = pnand %p1274_p13, %p1262_p12  ;;  %s1280_s19 = scalar_lea.vmem %s1279_s18, 512 }
  0x2f   : > { %p1281_p3 = scmp.lt.s32.totalorder %s258_s10, %s1279_s18  ;;  %p1282_p6 = scmp.lt.s32.totalorder %s1280_s19, %s1273_s16 }
  0x30   : > { %p1277_p2 = pneg %p1276_p0 }
  0x31   : > { %p1283_p8 = por %p1282_p6, %p1281_p3 }
  0x33   : > { %p1284_p9 = pnand %p1283_p8, %p1277_p2 }
  0x35   : > { %1287 = shalt.err (!%p1284_p9)
}
  0x36   : > { %1123 = dma.hbm_to_vmem [thread:$0]  (!%p1558_p7), %s255_s7, 256, %s258_s10, %s244_s11  }
  0x37   : > { %s1026_s17 = sshll.u32 %s1426_s25, 12  ;;  %s268_s21 = scalar_lea.vmem [#allocation6], %s964_s14 }
  0x38   : > { %s275_s30 = sshll.u32 %s268_s21, 4  ;;  %s264_s8 = sand.u32 1, %s1430_s26   ;;  %s276_s30 = int_to_ptr.vmem [resolvable:$true] %s275_s30 }
  0x39   : > { %s274_s0 = scalar_lea.hbm %s1686_s1, %s1026_s17  ;;  %s265_s18 = scalar_lea.sflag [#allocation7], %s264_s8 }
  0x3a   : > { %s1301_s16 = scalar_lea.vmem %s276_s30, 4096  ;;  %s1436_s19 = smov [#allocation6]  }
  0x3b   : > { %p1302_p10 = scmp.ne.s32.totalorder %s276_s30, %s1301_s16  ;;  %s1306_s3 = sshll.u32 %s1436_s19, 4  ;;  %s1307_s3 = int_to_ptr.vmem [resolvable:$false] %s1306_s3 }
  0x3c   : > { %s1308_s11 = scalar_lea.vmem %s1307_s3, 8192  ;;  %p1309_p0 = scmp.lt.s32.totalorder %s276_s30, %s1307_s3 }
  0x3d   : > { %p1304_p11 = pnand %p1302_p10, %p1262_p12  ;;  %p1310_p2 = scmp.lt.s32.totalorder %s1308_s11, %s1301_s16 }
  0x3f   : > { %p1305_p13 = pneg %p1304_p11  ;;  %p1311_p3 = por %p1310_p2, %p1309_p0 }
  0x41   : > { %p1312_p6 = pnand %p1311_p3, %p1305_p13 }
  0x43   : > { %1315 = shalt.err (!%p1312_p6)
}
  0x44   : > { %s1702_s12 = smov 4   ;;  %s1703_s7 = smov 64  }
  0x45   : > { %1126 = dma.hbm_to_vmem [thread:$0]  (!%p1558_p7), %s274_s0, 4096, %s276_s30, %s265_s18, %s1703_s7, %s1703_s7, %s1702_s12  }
  0x46   : > { %287 = sbr.rel (%p1518_p5) target bundleno = 587 (0x24b), region = 40  ;;  %s289_s10 = sand.u32 (!%p1518_p5), 1, %s1414_s22  }
  0x47   : > { %s968_s14 = sshll.u32 (!%p1518_p5), %s289_s10, 4  ;;  %s290_s17 = scalar_lea.sflag (!%p1518_p5), [#allocation4], %s289_s10 }
  0x48   : > { %s1585_s21 = scalar_lea.vmem (!%p1518_p5), [#allocation3], %s968_s14 }
  0x4b   : > { %1389 = dma.done.wait (%p1514_p4), %s290_s17, 256  }
  0x4c   : > { %1391 = vsyncadd (%p1514_p4), %s290_s17, 4294967040  ;;  %s298_s3 = sand.u32 1, %s1506_s27   ;;  %s969_s13 = sshll.u32 %s289_s10, 8 }
  0x4d   : > { %s299_s0 = scalar_lea.sflag [#allocation7], %s298_s3  ;;  %s1592_s30 = scalar_lea.vmem [#allocation6], %s969_s13 }
  0x4e   : > { %1393 = dma.done.wait (%p1514_p4), %s299_s0, 4096  }
  0x4f   : > { %1395 = vsyncadd (%p1514_p4), %s299_s0, 4294963200 }
  0x50   : > { %1397 = dma.done.wait (%p60_p1), [#allocation7], 1024  }
  0x51   : > { %1399 = vsyncadd (%p60_p1), [#allocation7], 4294966272  ;;  %p971_p5 = scmp.ne.s32.totalorder %s1422_s24, 0 }
  0x53   : > { %341 = sbr.rel (%p971_p5) target bundleno = 90 (0x5a), region = 56 }
  0x58   : > { %v1437_v0 = vmov 0.0  }
  0x59   : > { %342 = vst [vmem:[#allocation2] sm:$0xff] %v1437_v0 }
  0x5a PF: > { %v1190_v1 = vld [vmem:[%s1592_s30 + $0x78] sm:$0xff]   ;;  %v1194_v5 = vld [vmem:[%s1592_s30 + $0x70] sm:$0xff]   ;;  %v1198_v9 = vld [vmem:[%s1592_s30 + $0x68] sm:$0xff]   ;;  %p1008_p1 = scmp.ne.s32.totalorder %s1422_s24, 1 }
  0x5b   : > { %v1191_v2 = vld [vmem:[%s1592_s30 + $0xf8] sm:$0xff]   ;;  %1027 = vmatprep.subr.bf16.mxu0 %v1190_v1  ;;  %v1195_v6 = vld [vmem:[%s1592_s30 + $0xf0] sm:$0xff]   ;;  %v1199_v10 = vld [vmem:[%s1592_s30 + $0xe8] sm:$0xff]  }
  0x5c   : > { %v1192_v3 = vld [vmem:[%s1592_s30 + $0x38] sm:$0xff]   ;;  %1049 = vmatprep.subr.bf16.mxu1 %v1191_v2  ;;  %v1196_v7 = vld [vmem:[%s1592_s30 + $0x30] sm:$0xff]   ;;  %v1200_v11 = vld [vmem:[%s1592_s30 + $0x28] sm:$0xff]  }
  0x5d   : > { %v1193_v4 = vld [vmem:[%s1592_s30 + $0xb8] sm:$0xff]   ;;  %1028 = vmatpush3.bf16.msra.mxu0 %v1192_v3  ;;  %v1197_v8 = vld [vmem:[%s1592_s30 + $0xb0] sm:$0xff]   ;;  %v1201_v12 = vld [vmem:[%s1592_s30 + $0xa8] sm:$0xff]  }
  0x5e   : > { %1050 = vmatpush3.bf16.msra.mxu1 %v1193_v4  ;;  %1029 = vmatprep.subr.bf16.mxu0 %v1194_v5  ;;  %v1202_v13 = vld [vmem:[%s1592_s30 + $0x60] sm:$0xff]   ;;  %v1206_v17 = vld [vmem:[%s1592_s30 + $0x58] sm:$0xff]   ;;  %v1210_v21 = vld [vmem:[%s1592_s30 + $0x50] sm:$0xff]  }
  0x5f   : > { %1051 = vmatprep.subr.bf16.mxu1 %v1195_v6  ;;  %v1203_v14 = vld [vmem:[%s1592_s30 + $0xe0] sm:$0xff]   ;;  %v1207_v18 = vld [vmem:[%s1592_s30 + $0xd8] sm:$0xff]   ;;  %v1211_v22 = vld [vmem:[%s1592_s30 + $0xd0] sm:$0xff]  }
  0x60   : > { %v1204_v15 = vld [vmem:[%s1592_s30 + $0x20] sm:$0xff]   ;;  %v1208_v19 = vld [vmem:[%s1592_s30 + $0x18] sm:$0xff]   ;;  %v1212_v23 = vld [vmem:[%s1592_s30 + $0x10] sm:$0xff]  }
  0x61   : > { %1030 = vmatpush3.bf16.msra.mxu0 %v1196_v7  ;;  %v1205_v16 = vld [vmem:[%s1592_s30 + $0xa0] sm:$0xff]   ;;  %v1209_v20 = vld [vmem:[%s1592_s30 + $0x98] sm:$0xff]   ;;  %v1213_v24 = vld [vmem:[%s1592_s30 + $0x90] sm:$0xff]  }
  0x62   : > { %1052 = vmatpush3.bf16.msra.mxu1 %v1197_v8  ;;  %1031 = vmatprep.subr.bf16.mxu0 %v1198_v9  ;;  %v1214_v25 = vld [vmem:[%s1592_s30 + $0x48] sm:$0xff]   ;;  %v1218_v29 = vld [vmem:[%s1592_s30 + $0x40] sm:$0xff]   ;;  %v343_v45 = vld [vmem:[#allocation2] sm:$0xff] }
  0x63   : > { %1053 = vmatprep.subr.bf16.mxu1 %v1199_v10  ;;  %v1215_v26 = vld [vmem:[%s1592_s30 + $0xc8] sm:$0xff]   ;;  %v1219_v30 = vld [vmem:[%s1592_s30 + $0xc0] sm:$0xff]  }
  0x64   : > { %v1216_v27 = vld [vmem:[%s1592_s30 + $0x8] sm:$0xff]   ;;  %v1220_v31 = vld [vmem:[%s1592_s30] sm:$0xff]  }
  0x65   : > { %1032 = vmatpush3.bf16.msra.mxu0 %v1200_v11  ;;  %v1217_v28 = vld [vmem:[%s1592_s30 + $0x88] sm:$0xff]   ;;  %v1221_v32 = vld [vmem:[%s1592_s30 + $0x80] sm:$0xff]  }
  0x66   : > { %1054 = vmatpush3.bf16.msra.mxu1 %v1201_v12  ;;  %1033 = vmatprep.subr.bf16.mxu0 %v1202_v13  ;;  %v344_v33 = vld [vmem:[%s1585_s21] sm:$0xff]  ;;  %v345_v34 = vld [vmem:[%s1585_s21 + $0x8] sm:$0xff] }
  0x67   : > { %1055 = vmatprep.subr.bf16.mxu1 %v1203_v14  ;;  %v972_v35 = vcombine.low %v344_v33, %v344_v33  ;;  %v973_v36 = vcombine.high %v344_v33, %v344_v33  ;;  %v974_v37 = vcombine.low %v345_v34, %v345_v34  ;;  %v975_v38 = vcombine.high %v345_v34, %v345_v34 }
  0x69   : > { %1034 = vmatpush3.bf16.msra.mxu0 %v1204_v15  ;;  %648 = vmatprep.mubr.bf16.mxu0 %v973_v36 }
  0x6a   : > { %1056 = vmatpush3.bf16.msra.mxu1 %v1205_v16  ;;  %1035 = vmatprep.subr.bf16.mxu0 %v1206_v17 }
  0x6b   : > { %1057 = vmatprep.subr.bf16.mxu1 %v1207_v18  ;;  %688 = vmatprep.mubr.bf16.mxu1 %v975_v38 }
  0x6d   : > { %1036 = vmatpush3.bf16.msra.mxu0 %v1208_v19 }
  0x6e   : > { %1058 = vmatpush3.bf16.msra.mxu1 %v1209_v20  ;;  %1037 = vmatprep.subr.bf16.mxu0 %v1210_v21 }
  0x6f   : > { %1059 = vmatprep.subr.bf16.mxu1 %v1211_v22 }
  0x71   : > { %1038 = vmatpush3.bf16.msra.mxu0 %v1212_v23 }
  0x72   : > { %1060 = vmatpush3.bf16.msra.mxu1 %v1213_v24  ;;  %1039 = vmatprep.subr.bf16.mxu0 %v1214_v25 }
  0x73   : > { %1061 = vmatprep.subr.bf16.mxu1 %v1215_v26 }
  0x75   : > { %1040 = vmatpush3.bf16.msra.mxu0 %v1216_v27 }
  0x76   : > { %1062 = vmatpush3.bf16.msra.mxu1 %v1217_v28  ;;  %1041 = vmatprep.subr.bf16.mxu0 %v1218_v29 }
  0x77   : > { %1063 = vmatprep.subr.bf16.mxu1 %v1219_v30 }
  0x79   : > { %1042 = vmatpush3.bf16.msra.mxu0 %v1220_v31 }
  0x7a   : > { %1064 = vmatpush3.bf16.msra.mxu1 %v1221_v32 }
  0x7c   : > { %649 = vmatmul.mubr.bf16.vlgmr.msra.gmra.mxu0 %v972_v35 }
  0x7d   : > { %689 = vmatmul.mubr.bf16.vlgmr.msra.gmra.mxu1 %v974_v37 }
 0x13c   : > { %v1043_v39 = vpop.f32.mrf.mxu0 }
 0x13d   : > { %v1065_v40 = vpop.f32.mrf.mxu1 }
 0x13e   : > { %v1044_v41 = vpop.f32.mrf.mxu0 }
 0x13f   : > { %v1066_v42 = vpop.f32.mrf.mxu1  ;;  %v1045_v43 = vadd.f32 %v1044_v41, %v1043_v39 }
 0x140   : > { %v1067_v44 = vadd.f32 %v1066_v42, %v1065_v40  ;;  %v1046_v46 = vpop.f32.mrf.mxu0 }
 0x141   : > { %v1068_v47 = vpop.f32.mrf.mxu1 }
 0x142   : > { %v691_v48 = vadd.f32 %v1067_v44, %v1045_v43  ;;  %v1047_v49 = vpop.f32.mrf.mxu0  ;;  %701 = sbr.rel (%p1008_p1) target bundleno = 559 (0x22f), region = 60 }
 0x143   : > { %v1069_v50 = vpop.f32.mrf.mxu1 }
 0x144   : > { %v696_v51 = vadd.f32 %v691_v48, %v343_v45 }
 0x146   : > { %697 = vst [vmem:[#allocation2] sm:$0xff] %v696_v51 }
 0x147   : > { %v1226_v52 = vld [vmem:[#allocation8 + $0x38] sm:$0xff]   ;;  %v1438_v53 = vmov 0.0   ;;  %v1227_v54 = vld [vmem:[#allocation8 + $0x30] sm:$0xff]   ;;  %vm1439_vm0 = vmmov 0   ;;  %v1228_v55 = vld [vmem:[#allocation8 + $0x28] sm:$0xff]  }
 0x148   : > { %1080 = vmatprep.subr.bf16.mxu0 %v1438_v53  ;;  %1096 = vmatprep.mubr.msk.bf16.mxu0 %vm1439_vm0, %v1438_v53  ;;  %v1009_v57 = vld [vmem:[%s1687_s2] ss:$0 sm:$0xff]  ;;  %v1229_v59 = vld [vmem:[#allocation8 + $0x20] sm:$0xff]   ;;  %v1231_v62 = vld [vmem:[#allocation8 + $0x10] sm:$0xff]  }
 0x149   : > { %1081 = vmatpush3.bf16.msra.mxu0 %v1226_v52  ;;  %v1230_v61 = vld [vmem:[#allocation8 + $0x18] sm:$0xff]   ;;  %v1232_v63 = vld [vmem:[#allocation8 + $0x8] sm:$0xff]   ;;  %v1233_v0 = vld [vmem:[#allocation8] sm:$0xff]  }
 0x14a   : > { %1082 = vmatprep.subr.bf16.mxu0 %v1438_v53  ;;  %v1010_v2 = vld [vmem:[%s1689_s4] ss:$0 sm:$0xff] }
 0x14d   : > { %1083 = vmatpush3.bf16.msra.mxu0 %v1227_v54  ;;  %v702_v56 = vld [vmem:[#allocation2] sm:$0xff] }
 0x14e   : > { %1084 = vmatprep.subr.bf16.mxu0 %v1438_v53  ;;  %v710_v58 = vadd.f32 %v1009_v57, %v702_v56 }
 0x150   : > { %v711_v60 = vmax.f32 %v710_v58, 0.0 }
 0x151   : > { %1085 = vmatpush3.bf16.msra.mxu0 %v1228_v55 }
 0x152   : > { %1086 = vmatprep.subr.bf16.mxu0 %v1438_v53  ;;  %712 = vst [vmem:[#allocation9] sm:$0xff] %v711_v60  ;;  %v713_v1 = vpack.c.bf16 %v711_v60, %v711_v60 }
 0x155   : > { %1087 = vmatpush3.bf16.msra.mxu0 %v1229_v59 }
 0x156   : > { %1088 = vmatprep.subr.bf16.mxu0 %v1438_v53 }
 0x159   : > { %1089 = vmatpush3.bf16.msra.mxu0 %v1230_v61 }
 0x15a   : > { %1090 = vmatprep.subr.bf16.mxu0 %v1438_v53 }
 0x15d   : > { %1091 = vmatpush3.bf16.msra.mxu0 %v1231_v62 }
 0x15e   : > { %1092 = vmatprep.subr.bf16.mxu0 %v1438_v53 }
 0x161   : > { %1093 = vmatpush3.bf16.msra.mxu0 %v1232_v63 }
 0x162   : > { %1094 = vmatprep.subr.bf16.mxu0 %v1438_v53 }
 0x165   : > { %1095 = vmatpush3.bf16.msra.mxu0 %v1233_v0 }
 0x168   : > { %1097 = vmatmul.mubr.bf16.vlgmr.msra.gmra.mxu0 %v713_v1 }
 0x228   : > { %v819_v3 = vpop.f32.mrf.mxu0 }
 0x229   : > { %v820_v4 = vadd.f32 %v1010_v2, %v819_v3 }
 0x22a   : > { %v1098_v5 = vpop.f32.mrf.mxu0 }
 0x22b   : > { %825 = vst [vmem:[#allocation10] sm:$0xff] %v820_v4 }
 0x22c   : > { %v822_v6 = vpop.f32.mrf.mxu0 }
 0x22e   : > { %v1099_v7 = vpop.f32.mrf.mxu0 }
 0x22f PF: > { %p1130_p4 = scmp.eq.s32.totalorder %s1506_s27, 1  ;;  %s1440_s15 = smov [#allocation9]  }
 0x230   : > { %s835_s18 = sshll.u32 %s1440_s15, 4  ;;  %s1441_s16 = smov [#allocation10]   ;;  %s836_s18 = int_to_ptr.vmem [resolvable:$true] %s835_s18 }
 0x231   : > { %s848_s19 = sshll.u32 %s1441_s16, 4  ;;  %s1316_s11 = scalar_lea.vmem %s836_s18, 128  ;;  %s849_s19 = int_to_ptr.vmem [resolvable:$true] %s848_s19 }
 0x232   : > { %p1317_p7 = scmp.ne.s32.totalorder %s836_s18, %s1316_s11  ;;  %p1323_p9 = scmp.lt.s32.totalorder %s836_s18, %s836_s18 }
 0x233   : > { %p1324_p10 = scmp.lt.s32.totalorder %s1316_s11, %s1316_s11 }
 0x234   : > { %p1318_p12 = pnand %p1317_p7, %p1130_p4 }
 0x235   : > { %p1325_p11 = por %p1324_p10, %p1323_p9 }
 0x236   : > { %p1319_p8 = pneg %p1318_p12 }
 0x238   : > { %p1326_p13 = pnand %p1325_p11, %p1319_p8 }
 0x23a   : > { %1329 = shalt.err (!%p1326_p13)
}
 0x23b   : > { %1109 = dma.vmem_to_hbm [thread:$0]  (%p1130_p4), %s836_s18, 128, %s1690_s5, [#allocation5]  }
 0x23c   : > { %s1340_s10 = scalar_lea.vmem %s849_s19, 128  ;;  %p1347_p6 = scmp.lt.s32.totalorder %s849_s19, %s849_s19 }
 0x23d   : > { %p1341_p0 = scmp.ne.s32.totalorder %s849_s19, %s1340_s10  ;;  %p1348_p5 = scmp.lt.s32.totalorder %s1340_s10, %s1340_s10 }
 0x23f   : > { %p1342_p2 = pnand %p1341_p0, %p1130_p4  ;;  %p1349_p1 = por %p1348_p5, %p1347_p6 }
 0x241   : > { %p1343_p3 = pneg %p1342_p2 }
 0x243   : > { %p1350_p7 = pnand %p1349_p1, %p1343_p3 }
 0x245   : > { %1353 = shalt.err (!%p1350_p7)
}
 0x246   : > { %1111 = dma.vmem_to_hbm [thread:$0]  (%p1130_p4), %s849_s19, 128, %s1691_s6, [#allocation11]  }
 0x247   : > { %1401 = dma.done.wait (%p1130_p4), [#allocation5], 128  }
 0x248   : > { %1403 = vsyncadd (%p1130_p4), [#allocation5], 4294967168 }
 0x249   : > { %1405 = dma.done.wait (%p1130_p4), [#allocation11], 128  }
 0x24a   : > { %1407 = vsyncadd (%p1130_p4), [#allocation11], 4294967168 }
 0x24b PF: > { %s25_s26 = sadd.s32 1, %s1430_s26   ;;  %s1704_s21 = smov %s1414_s22 }
 0x24c   : > { %p22_p12 = scmp.ge.s32.totalorder %s25_s26, 4   ;;  %s1705_s22 = smov %s1418_s23 }
 0x24d   : > { %s1706_s23 = smov %s1553_s20  ;;  %s1707_s24 = smov %s1426_s25 }
 0x24e   : > { %s1708_s25 = smov %s1710_s9  ;;  %24 = sbr.rel (!%p22_p12) target bundleno = 11 (0xb), region = 112 }
 0x253   :  { %865 = vsyncpa [#allocation4], 1 }
 0x254   :  { %867 = vsyncpa [#allocation4 + $0x1], 1 }
 0x255   :  { %868 = vsyncpa [#allocation7], 1 }
 0x256   :  { %870 = vsyncpa [#allocation7 + $0x1], 1 }
 0x257   :  { %871 = vsyncpa [#allocation5], 1 }
 0x258   :  { %873 = vsyncpa [#allocation5 + $0x1], 1 }
 0x259   :  { %874 = vsyncpa [#allocation11], 1 }

</bundles_post_ra>
